<compile_context>
chip_gen: v7x
topology: tpu7x:2x2x1
jax: 0.10.0
libtpu: 0.0.40
codegen_flags: <defaults>
</compile_context>

<pallas_src>
import math

import jax
import jax.numpy as jnp
from jax.experimental import pallas as pl
from jax.experimental.pallas import tpu as pltpu


def _round_up(x, m):
    return (x + m - 1) // m * m


# ---------------------------------------------------------------------------
# Pallas kernel: fused time-embedding + 3-layer MLP over one batch tile.
#   emb = t * freqs ;  temb = [sin(emb), cos(emb)]
#   h = relu(x @ w1x + sin @ w1ts + cos @ w1tc + b1)
#   h = relu(h @ w2 + b2)
#   o = h @ w3p + b3p            (w3p/b3p zero-padded to a lane-dense width)
# ---------------------------------------------------------------------------
def mlp_kernel(x_ref, t_ref, freq_ref, w1x_ref, w1ts_ref, w1tc_ref, b1_ref,
               w2_ref, b2_ref, w3_ref, b3_ref, o_ref):
    # In-kernel sinusoidal time embedding (sin/cos run on the EUP).
    emb = t_ref[...] * freq_ref[...]                    # (tile_b, half_dim) f32
    sin_e = jnp.sin(emb).astype(jnp.bfloat16)
    cos_e = jnp.cos(emb).astype(jnp.bfloat16)

    x = x_ref[...].astype(jnp.bfloat16)
    h = (jnp.dot(x, w1x_ref[...], preferred_element_type=jnp.float32)
         + jnp.dot(sin_e, w1ts_ref[...], preferred_element_type=jnp.float32)
         + jnp.dot(cos_e, w1tc_ref[...], preferred_element_type=jnp.float32)
         + b1_ref[...])
    h = jnp.maximum(h, 0.0)
    h = jnp.dot(h.astype(jnp.bfloat16), w2_ref[...],
                preferred_element_type=jnp.float32) + b2_ref[...]
    h = jnp.maximum(h, 0.0)
    o_ref[...] = jnp.dot(h.astype(jnp.bfloat16), w3_ref[...],
                         preferred_element_type=jnp.float32) + b3_ref[...]


def run_mlp(x_flat, t_col, freqs, w1x, w1ts, w1tc, b1, w2, b2, w3p, b3p,
            *, tile_b_max=512):
    """x_flat: (B, data_dim) f32, t_col: (B, 1) f32 -> (B, data_dim) f32."""
    B, data_dim = x_flat.shape
    half_dim = freqs.shape[1]
    hidden = w2.shape[0]
    out_pad = w3p.shape[1]

    # Batch tile: multiple of 8 sublanes, capped at tile_b_max; pad B to a
    # whole number of tiles.
    tile_b = min(tile_b_max, _round_up(B, 8))
    b_pad = _round_up(B, tile_b)
    if b_pad != B:
        pad = b_pad - B
        x_flat = jnp.pad(x_flat, ((0, pad), (0, 0)))
        t_col = jnp.pad(t_col, ((0, pad), (0, 0)))

    grid = (b_pad // tile_b,)

    def const_spec(shape):
        # Weights/biases: same block every grid step -> DMA'd once, VMEM-resident.
        return pl.BlockSpec(shape, lambda i: tuple(0 for _ in shape))

    flops = 2 * b_pad * hidden * (data_dim + 2 * half_dim + hidden + out_pad)
    transcendentals = 2 * b_pad * half_dim
    bytes_accessed = (
        x_flat.size * 4 + t_col.size * 4 + b_pad * out_pad * 4
        + (w1x.size + w1ts.size + w1tc.size + w2.size + w3p.size) * 2
        + (b1.size + b2.size + b3p.size + freqs.size) * 4
    )

    out = pl.pallas_call(
        mlp_kernel,
        out_shape=jax.ShapeDtypeStruct((b_pad, out_pad), jnp.float32),
        grid=grid,
        in_specs=[
            pl.BlockSpec((tile_b, data_dim), lambda i: (i, 0)),
            pl.BlockSpec((tile_b, 1), lambda i: (i, 0)),
            const_spec(freqs.shape),
            const_spec(w1x.shape),
            const_spec(w1ts.shape),
            const_spec(w1tc.shape),
            const_spec(b1.shape),
            const_spec(w2.shape),
            const_spec(b2.shape),
            const_spec(w3p.shape),
            const_spec(b3p.shape),
        ],
        out_specs=pl.BlockSpec((tile_b, out_pad), lambda i: (i, 0)),
        compiler_params=pltpu.CompilerParams(
            dimension_semantics=("parallel",),
            vmem_limit_bytes=32 * 1024 * 1024,
        ),
        cost_estimate=pl.CostEstimate(
            flops=flops, transcendentals=transcendentals,
            bytes_accessed=bytes_accessed),
    )(x_flat, t_col, freqs, w1x, w1ts, w1tc, b1, w2, b2, w3p, b3p)

    return out[:B, :data_dim]


# ---------------------------------------------------------------------------
# Glue: sinusoidal time embedding (matches get_sinusoidal_time_embedding);
# used only by the pure-JAX reference below.
# ---------------------------------------------------------------------------
def sinusoidal_freqs(embedding_dim):
    half_dim = embedding_dim // 2
    denom = max(half_dim - 1, 1)  # guard divide-by-zero for embedding_dim == 2
    return jnp.exp(
        jnp.arange(half_dim, dtype=jnp.float32) * -(math.log(10000.0) / denom)
    )[None, :]                                           # (1, half_dim)


def get_sinusoidal_time_embedding(timesteps, embedding_dim):
    freqs = sinusoidal_freqs(embedding_dim)
    emb = timesteps.astype(jnp.float32)[:, None] * freqs
    return jnp.concatenate([jnp.sin(emb), jnp.cos(emb)], axis=1)


# ---------------------------------------------------------------------------
# Model wrapper
# ---------------------------------------------------------------------------
class SimpleDiffusionModel3DPallas:
    def __init__(self, data_dim, time_embedding_dim=16, hidden_dim=128, key=None):
        self.data_dim = data_dim
        self.time_embedding_dim = time_embedding_dim
        self.hidden_dim = hidden_dim
        if key is None:
            key = jax.random.PRNGKey(0)
        k1, k2, k3, k4, k5, k6 = jax.random.split(key, 6)
        in_dim = data_dim + time_embedding_dim
        half_dim = time_embedding_dim // 2

        def linear_init(kw, kb, fan_in, fan_out):
            bound = 1.0 / math.sqrt(fan_in)
            w = jax.random.uniform(kw, (fan_in, fan_out), jnp.float32, -bound, bound)
            b = jax.random.uniform(kb, (1, fan_out), jnp.float32, -bound, bound)
            return w, b

        w1, b1 = linear_init(k1, k2, in_dim, hidden_dim)
        w2, b2 = linear_init(k3, k4, hidden_dim, hidden_dim)
        w3, b3 = linear_init(k5, k6, hidden_dim, data_dim)

        # Split w1 so the kernel never needs a concatenated (data_dim+16) input:
        # x part, sin part, cos part.
        self.w1x = w1[:data_dim].astype(jnp.bfloat16)                       # (data_dim, hidden)
        self.w1ts = w1[data_dim:data_dim + half_dim].astype(jnp.bfloat16)   # (half,     hidden)
        self.w1tc = w1[data_dim + half_dim:].astype(jnp.bfloat16)           # (half,     hidden)
        self.b1 = b1                                                        # f32
        self.w2 = w2.astype(jnp.bfloat16)
        self.b2 = b2
        # Zero-pad the last layer to a lane-dense (multiple-of-128) output width.
        self.out_pad = _round_up(data_dim, 128)
        w3p = jnp.zeros((hidden_dim, self.out_pad), jnp.float32)
        w3p = w3p.at[:, :data_dim].set(w3)
        b3p = jnp.zeros((1, self.out_pad), jnp.float32)
        b3p = b3p.at[:, :data_dim].set(b3)
        self.w3p = w3p.astype(jnp.bfloat16)
        self.b3p = b3p
        self.freqs = sinusoidal_freqs(time_embedding_dim)                   # (1, half)

    def __call__(self, x, t):
        B = x.shape[0]
        x_flat = x.reshape(B, -1)
        t_col = t.astype(jnp.float32).reshape(B, 1)
        out = run_mlp(x_flat, t_col, self.freqs, self.w1x, self.w1ts, self.w1tc,
                      self.b1, self.w2, self.b2, self.w3p, self.b3p)
        return out.reshape(B, -1, 3)


# ---------------------------------------------------------------------------
# Pure-JAX reference (same bf16-operand / f32-accumulate recipe) for checking
# ---------------------------------------------------------------------------
def reference_forward(model, x, t):
    B = x.shape[0]
    bf = jnp.bfloat16
    half = model.time_embedding_dim // 2
    t_emb = get_sinusoidal_time_embedding(t, model.time_embedding_dim)
    sin_e, cos_e = t_emb[:, :half], t_emb[:, half:]
    x_flat = x.reshape(B, -1)
    h = (jnp.dot(x_flat.astype(bf), model.w1x, preferred_element_type=jnp.float32)
         + jnp.dot(sin_e.astype(bf), model.w1ts, preferred_element_type=jnp.float32)
         + jnp.dot(cos_e.astype(bf), model.w1tc, preferred_element_type=jnp.float32)
         + model.b1)
    h = jnp.maximum(h, 0.0)
    h = jnp.dot(h.astype(bf), model.w2, preferred_element_type=jnp.float32) + model.b2
    h = jnp.maximum(h, 0.0)
    h = jnp.dot(h.astype(bf), model.w3p, preferred_element_type=jnp.float32) + model.b3p
    return h[:, :model.data_dim].reshape(B, -1, 3)


if __name__ == "__main__":
    key = jax.random.PRNGKey(0)
    kx, kt, kp = jax.random.split(key, 3)

    B, N = 8, 4                 # x: (8, 4, 3) -> data_dim = 12
    data_dim = N * 3
    x = jax.random.normal(kx, (B, N, 3), dtype=jnp.float32)
    t = jax.random.randint(kt, (B,), 0, 1000, dtype=jnp.int32)

    model = SimpleDiffusionModel3DPallas(
        data_dim=data_dim, time_embedding_dim=16, hidden_dim=128, key=kp
    )

    out = jax.block_until_ready(model(x, t))
    ref = jax.block_until_ready(reference_forward(model, x, t))

    assert out.shape == (B, N, 3), out.shape
    assert jnp.allclose(out, ref, atol=2e-3, rtol=2e-3), "mismatch vs reference"

    print("KERNEL_OK")
</pallas_src>

<mosaic_0001>
module attributes {stable_mosaic.version = 11 : i64} {
  func.func @mlp_kernel(%arg0: i32, %arg1: memref<8x12xf32, #tpu.memory_space<vmem>>, %arg2: memref<8x1xf32, #tpu.memory_space<vmem>>, %arg3: memref<1x8xf32, #tpu.memory_space<vmem>>, %arg4: memref<12x128xbf16, #tpu.memory_space<vmem>>, %arg5: memref<8x128xbf16, #tpu.memory_space<vmem>>, %arg6: memref<8x128xbf16, #tpu.memory_space<vmem>>, %arg7: memref<1x128xf32, #tpu.memory_space<vmem>>, %arg8: memref<128x128xbf16, #tpu.memory_space<vmem>>, %arg9: memref<1x128xf32, #tpu.memory_space<vmem>>, %arg10: memref<128x128xbf16, #tpu.memory_space<vmem>>, %arg11: memref<1x128xf32, #tpu.memory_space<vmem>>, %arg12: memref<8x128xf32, #tpu.memory_space<vmem>>) attributes {dimension_semantics = [#tpu.dimension_semantics<parallel>], iteration_bounds = array<i64: 1>, scalar_prefetch = 0 : i64, scratch_operands = 0 : i64, tpu.core_type = #tpu.core_type<tc>, window_params = [{transform_indices = @transform_0, window_bounds = array<i64: 8, 12>}, {transform_indices = @transform_1, window_bounds = array<i64: 8, 1>}, {pipeline_mode = #tpu.pipeline_mode<synchronous>, transform_indices = @transform_2, window_bounds = array<i64: 1, 8>}, {pipeline_mode = #tpu.pipeline_mode<synchronous>, transform_indices = @transform_3, window_bounds = array<i64: 12, 128>}, {pipeline_mode = #tpu.pipeline_mode<synchronous>, transform_indices = @transform_4, window_bounds = array<i64: 8, 128>}, {pipeline_mode = #tpu.pipeline_mode<synchronous>, transform_indices = @transform_5, window_bounds = array<i64: 8, 128>}, {pipeline_mode = #tpu.pipeline_mode<synchronous>, transform_indices = @transform_6, window_bounds = array<i64: 1, 128>}, {pipeline_mode = #tpu.pipeline_mode<synchronous>, transform_indices = @transform_7, window_bounds = array<i64: 128, 128>}, {pipeline_mode = #tpu.pipeline_mode<synchronous>, transform_indices = @transform_8, window_bounds = array<i64: 1, 128>}, {pipeline_mode = #tpu.pipeline_mode<synchronous>, transform_indices = @transform_9, window_bounds = array<i64: 128, 128>}, {pipeline_mode = #tpu.pipeline_mode<synchronous>, transform_indices = @transform_10, window_bounds = array<i64: 1, 128>}, {transform_indices = @transform_11, window_bounds = array<i64: 8, 128>}]} {
    %c0 = arith.constant 0 : index
    %c0_0 = arith.constant 0 : index
    %0 = vector.load %arg2[%c0, %c0_0] : memref<8x1xf32, #tpu.memory_space<vmem>>, vector<8x1xf32>
    %c0_1 = arith.constant 0 : index
    %c0_2 = arith.constant 0 : index
    %1 = vector.load %arg3[%c0_1, %c0_2] : memref<1x8xf32, #tpu.memory_space<vmem>>, vector<1x8xf32>
    %2 = vector.broadcast %0 : vector<8x1xf32> to vector<8x8xf32>
    %3 = vector.broadcast %1 : vector<1x8xf32> to vector<8x8xf32>
    %4 = arith.mulf %2, %3 : vector<8x8xf32>
    %5 = math.sin %4 : vector<8x8xf32>
    %6 = arith.truncf %5 : vector<8x8xf32> to vector<8x8xbf16>
    %7 = math.cos %4 : vector<8x8xf32>
    %8 = arith.truncf %7 : vector<8x8xf32> to vector<8x8xbf16>
    %c0_3 = arith.constant 0 : index
    %c0_4 = arith.constant 0 : index
    %9 = vector.load %arg1[%c0_3, %c0_4] : memref<8x12xf32, #tpu.memory_space<vmem>>, vector<8x12xf32>
    %10 = arith.truncf %9 : vector<8x12xf32> to vector<8x12xbf16>
    %c0_5 = arith.constant 0 : index
    %c0_6 = arith.constant 0 : index
    %11 = vector.load %arg4[%c0_5, %c0_6] : memref<12x128xbf16, #tpu.memory_space<vmem>>, vector<12x128xbf16>
    %cst = arith.constant dense<0.000000e+00> : vector<8x128xf32>
    %12 = tpu.matmul %10, %11, %cst {dimension_numbers = #tpu.dot_dimension_numbers<[1], [0], [0], [1], [0, 0, 1, 1], [], []>} : vector<8x12xbf16>, vector<12x128xbf16>, vector<8x128xf32> -> vector<8x128xf32>
    %c0_7 = arith.constant 0 : index
    %c0_8 = arith.constant 0 : index
    %13 = vector.load %arg5[%c0_7, %c0_8] : memref<8x128xbf16, #tpu.memory_space<vmem>>, vector<8x128xbf16>
    %cst_9 = arith.constant dense<0.000000e+00> : vector<8x128xf32>
    %14 = tpu.matmul %6, %13, %cst_9 {dimension_numbers = #tpu.dot_dimension_numbers<[1], [0], [0], [1], [0, 0, 1, 1], [], []>} : vector<8x8xbf16>, vector<8x128xbf16>, vector<8x128xf32> -> vector<8x128xf32>
    %15 = arith.addf %12, %14 : vector<8x128xf32>
    %c0_10 = arith.constant 0 : index
    %c0_11 = arith.constant 0 : index
    %16 = vector.load %arg6[%c0_10, %c0_11] : memref<8x128xbf16, #tpu.memory_space<vmem>>, vector<8x128xbf16>
    %cst_12 = arith.constant dense<0.000000e+00> : vector<8x128xf32>
    %17 = tpu.matmul %8, %16, %cst_12 {dimension_numbers = #tpu.dot_dimension_numbers<[1], [0], [0], [1], [0, 0, 1, 1], [], []>} : vector<8x8xbf16>, vector<8x128xbf16>, vector<8x128xf32> -> vector<8x128xf32>
    %18 = arith.addf %15, %17 : vector<8x128xf32>
    %c0_13 = arith.constant 0 : index
    %c0_14 = arith.constant 0 : index
    %19 = vector.load %arg7[%c0_13, %c0_14] : memref<1x128xf32, #tpu.memory_space<vmem>>, vector<1x128xf32>
    %20 = vector.broadcast %19 : vector<1x128xf32> to vector<8x128xf32>
    %21 = arith.addf %18, %20 : vector<8x128xf32>
    %cst_15 = arith.constant 0.000000e+00 : f32
    %22 = vector.broadcast %cst_15 : f32 to vector<8x128xf32>
    %23 = arith.maximumf %21, %22 : vector<8x128xf32>
    %24 = arith.truncf %23 : vector<8x128xf32> to vector<8x128xbf16>
    %c0_16 = arith.constant 0 : index
    %c0_17 = arith.constant 0 : index
    %25 = vector.load %arg8[%c0_16, %c0_17] : memref<128x128xbf16, #tpu.memory_space<vmem>>, vector<128x128xbf16>
    %cst_18 = arith.constant dense<0.000000e+00> : vector<8x128xf32>
    %26 = tpu.matmul %24, %25, %cst_18 {dimension_numbers = #tpu.dot_dimension_numbers<[1], [0], [0], [1], [0, 0, 1, 1], [], []>} : vector<8x128xbf16>, vector<128x128xbf16>, vector<8x128xf32> -> vector<8x128xf32>
    %c0_19 = arith.constant 0 : index
    %c0_20 = arith.constant 0 : index
    %27 = vector.load %arg9[%c0_19, %c0_20] : memref<1x128xf32, #tpu.memory_space<vmem>>, vector<1x128xf32>
    %28 = vector.broadcast %27 : vector<1x128xf32> to vector<8x128xf32>
    %29 = arith.addf %26, %28 : vector<8x128xf32>
    %cst_21 = arith.constant 0.000000e+00 : f32
    %30 = vector.broadcast %cst_21 : f32 to vector<8x128xf32>
    %31 = arith.maximumf %29, %30 : vector<8x128xf32>
    %32 = arith.truncf %31 : vector<8x128xf32> to vector<8x128xbf16>
    %c0_22 = arith.constant 0 : index
    %c0_23 = arith.constant 0 : index
    %33 = vector.load %arg10[%c0_22, %c0_23] : memref<128x128xbf16, #tpu.memory_space<vmem>>, vector<128x128xbf16>
    %cst_24 = arith.constant dense<0.000000e+00> : vector<8x128xf32>
    %34 = tpu.matmul %32, %33, %cst_24 {dimension_numbers = #tpu.dot_dimension_numbers<[1], [0], [0], [1], [0, 0, 1, 1], [], []>} : vector<8x128xbf16>, vector<128x128xbf16>, vector<8x128xf32> -> vector<8x128xf32>
    %c0_25 = arith.constant 0 : index
    %c0_26 = arith.constant 0 : index
    %35 = vector.load %arg11[%c0_25, %c0_26] : memref<1x128xf32, #tpu.memory_space<vmem>>, vector<1x128xf32>
    %36 = vector.broadcast %35 : vector<1x128xf32> to vector<8x128xf32>
    %37 = arith.addf %34, %36 : vector<8x128xf32>
    %c0_27 = arith.constant 0 : index
    %c0_28 = arith.constant 0 : index
    %38 = vector.load %arg12[%c0_27, %c0_28] : memref<8x128xf32, #tpu.memory_space<vmem>>, vector<8x128xf32>
    tpu.vector_store %arg12[%c0_27, %c0_28], %37 {strides = array<i32>} : memref<8x128xf32, #tpu.memory_space<vmem>>, vector<8x128xf32>,
    return
  }
  func.func @transform_0(%arg0: i32) -> (i32, i32) {
    %c0_i32 = arith.constant 0 : i32
    %c0_i32_0 = arith.constant 0 : i32
    return %arg0, %c0_i32 : i32, i32
  }
  func.func @transform_1(%arg0: i32) -> (i32, i32) {
    %c0_i32 = arith.constant 0 : i32
    %c0_i32_0 = arith.constant 0 : i32
    return %arg0, %c0_i32 : i32, i32
  }
  func.func @transform_2(%arg0: i32) -> (i32, i32) {
    %c0_i32 = arith.constant 0 : i32
    %c0_i32_0 = arith.constant 0 : i32
    %c0_i32_1 = arith.constant 0 : i32
    return %c0_i32, %c0_i32_0 : i32, i32
  }
  func.func @transform_3(%arg0: i32) -> (i32, i32) {
    %c0_i32 = arith.constant 0 : i32
    %c0_i32_0 = arith.constant 0 : i32
    %c0_i32_1 = arith.constant 0 : i32
    return %c0_i32, %c0_i32_0 : i32, i32
  }
  func.func @transform_4(%arg0: i32) -> (i32, i32) {
    %c0_i32 = arith.constant 0 : i32
    %c0_i32_0 = arith.constant 0 : i32
    %c0_i32_1 = arith.constant 0 : i32
    return %c0_i32, %c0_i32_0 : i32, i32
  }
  func.func @transform_5(%arg0: i32) -> (i32, i32) {
    %c0_i32 = arith.constant 0 : i32
    %c0_i32_0 = arith.constant 0 : i32
    %c0_i32_1 = arith.constant 0 : i32
    return %c0_i32, %c0_i32_0 : i32, i32
  }
  func.func @transform_6(%arg0: i32) -> (i32, i32) {
    %c0_i32 = arith.constant 0 : i32
    %c0_i32_0 = arith.constant 0 : i32
    %c0_i32_1 = arith.constant 0 : i32
    return %c0_i32, %c0_i32_0 : i32, i32
  }
  func.func @transform_7(%arg0: i32) -> (i32, i32) {
    %c0_i32 = arith.constant 0 : i32
    %c0_i32_0 = arith.constant 0 : i32
    %c0_i32_1 = arith.constant 0 : i32
    return %c0_i32, %c0_i32_0 : i32, i32
  }
  func.func @transform_8(%arg0: i32) -> (i32, i32) {
    %c0_i32 = arith.constant 0 : i32
    %c0_i32_0 = arith.constant 0 : i32
    %c0_i32_1 = arith.constant 0 : i32
    return %c0_i32, %c0_i32_0 : i32, i32
  }
  func.func @transform_9(%arg0: i32) -> (i32, i32) {
    %c0_i32 = arith.constant 0 : i32
    %c0_i32_0 = arith.constant 0 : i32
    %c0_i32_1 = arith.constant 0 : i32
    return %c0_i32, %c0_i32_0 : i32, i32
  }
  func.func @transform_10(%arg0: i32) -> (i32, i32) {
    %c0_i32 = arith.constant 0 : i32
    %c0_i32_0 = arith.constant 0 : i32
    %c0_i32_1 = arith.constant 0 : i32
    return %c0_i32, %c0_i32_0 : i32, i32
  }
  func.func @transform_11(%arg0: i32) -> (i32, i32) {
    %c0_i32 = arith.constant 0 : i32
    %c0_i32_0 = arith.constant 0 : i32
    return %arg0, %c0_i32 : i32, i32
  }
}

</mosaic_0001>

<bundles_post_ra>
// kernel: tpu_custom_call.1
= control target key start
LH: loop header
LB: loop body
LE: loop exit
PB: predicated region body
PF: predicated region fallthrough
CT: control target
= control target key end

     0   :  { %16 = vsyncpa [#allocation3], 0  ;;  %s1165_s0 = inlined_call_operand.vmem [shape: f32[8,12], index: 0, kind: input, shape index: {}]   ;;  %s1166_s1 = inlined_call_operand.vmem [shape: f32[8,1], index: 1, kind: input, shape index: {}]   ;;  %s1167_s2 = inlined_call_operand.hbm [shape: f32[1,8], index: 2, kind: input, shape index: {}]   ;;  %s1168_s3 = inlined_call_operand.vmem [shape: bf16[12,128], index: 3, kind: input, shape index: {}]   ;;  %s1169_s4 = inlined_call_operand.vmem [shape: bf16[8,128], index: 4, kind: input, shape index: {}]   ;;  %s1170_s5 = inlined_call_operand.vmem [shape: bf16[8,128], index: 5, kind: input, shape index: {}]   ;;  %s1171_s6 = inlined_call_operand.vmem [shape: f32[1,128], index: 6, kind: input, shape index: {}]   ;;  %s1172_s7 = inlined_call_operand.hbm [shape: bf16[128,128], index: 7, kind: input, shape index: {}]   ;;  %s1173_s8 = inlined_call_operand.vmem [shape: f32[1,128], index: 8, kind: input, shape index: {}]   ;;  %s1174_s9 = inlined_call_operand.hbm [shape: bf16[128,128], index: 9, kind: input, shape index: {}]   ;;  %s1175_s10 = inlined_call_operand.vmem [shape: f32[1,128], index: 10, kind: input, shape index: {}]   ;;  %s1176_s11 = inlined_call_operand.hbm [shape: f32[8,128], index: 11, kind: output, shape index: {}]  }
   0x1   :  { %17 = vsyncpa [#allocation6], 0 }
   0x2   :  { %18 = vsyncpa [#allocation4], 0  ;;  %s956_s17 = smov [#allocation5]   ;;  %s862_s21 = scalar_lea.hbm %s1172_s7, 1024 }
   0x3   :  { %s46_s18 = sshll.u32 %s956_s17, 4  ;;  %p863_p0 = scmp.ne.s32.totalorder %s1172_s7, %s862_s21  ;;  %s47_s18 = int_to_ptr.vmem [resolvable:$true] %s46_s18 }
   0x4   :  { %p866_p1 = scmp.lt.u32.totalorder %s862_s21, %s1172_s7 }
   0x6   :  { %p868_p2 = pnand %p866_p1, %p863_p0 }
   0x8   :  { %871 = shalt.err (!%p868_p2)
}
   0x9   :  { %s872_s26 = scalar_lea.vmem %s47_s18, 1024  ;;  %p877_p4 = scmp.lt.s32.totalorder %s47_s18, %s47_s18 }
   0xa   :  { %p873_p3 = scmp.ne.s32.totalorder %s47_s18, %s872_s26  ;;  %p878_p5 = scmp.lt.s32.totalorder %s872_s26, %s872_s26 }
   0xc   :  { %p879_p6 = por %p878_p5, %p877_p4 }
   0xe   :  { %p880_p7 = pnand %p879_p6, %p873_p3 }
  0x10   :  { %883 = shalt.err (!%p880_p7)
}
  0x11   :  { %s957_s27 = smov 64   ;;  %s958_s28 = smov 4  }
  0x12   :  { %52 = dma.hbm_to_vmem [thread:$0]  %s1172_s7, 1024, %s47_s18, [#allocation6], %s957_s27, %s957_s27, %s958_s28  }
  0x13   :  { %s959_s12 = smov [#allocation2]   ;;  %s960_s14 = smov [#allocation7]  }
  0x14   :  { %s29_s13 = sshll.u32 %s959_s12, 4  ;;  %s60_s15 = sshll.u32 %s960_s14, 4  ;;  %s30_s13 = int_to_ptr.vmem [resolvable:$true] %s29_s13  ;;  %s61_s15 = int_to_ptr.vmem [resolvable:$true] %s60_s15 }
  0x15   :  { %s884_s19 = scalar_lea.hbm %s1167_s2, 16 }
  0x16   :  { %p885_p8 = scmp.ne.s32.totalorder %s1167_s2, %s884_s19  ;;  %p888_p9 = scmp.lt.u32.totalorder %s884_s19, %s1167_s2 }
  0x18   :  { %p890_p10 = pnand %p888_p9, %p885_p8 }
  0x1a   :  { %893 = shalt.err (!%p890_p10)
}
  0x1b   :  { %s894_s7 = scalar_lea.vmem %s30_s13, 16  ;;  %s898_s18 = scalar_lea.vmem %s30_s13, 32 }
  0x1c   :  { %p895_p11 = scmp.ne.s32.totalorder %s30_s13, %s894_s7  ;;  %p899_p12 = scmp.lt.s32.totalorder %s30_s13, %s30_s13 }
  0x1d   :  { %p900_p13 = scmp.lt.s32.totalorder %s898_s18, %s894_s7 }
  0x1f   :  { %p901_p0 = por %p900_p13, %p899_p12 }
  0x21   :  { %p902_p1 = pnand %p901_p0, %p895_p11 }
  0x23   :  { %905 = shalt.err (!%p902_p1)
}
  0x24   :  { %32 = dma.hbm_to_vmem [thread:$0]  %s1167_s2, 16, %s30_s13, [#allocation3]  }
  0x25   :  { %s906_s30 = scalar_lea.hbm %s1174_s9, 1024 }
  0x26   :  { %p907_p2 = scmp.ne.s32.totalorder %s1174_s9, %s906_s30  ;;  %p910_p3 = scmp.lt.u32.totalorder %s906_s30, %s1174_s9 }
  0x28   :  { %p912_p4 = pnand %p910_p3, %p907_p2 }
  0x2a   :  { %915 = shalt.err (!%p912_p4)
}
  0x2b   :  { %s916_s19 = scalar_lea.vmem %s61_s15, 1024  ;;  %p921_p6 = scmp.lt.s32.totalorder %s61_s15, %s61_s15 }
  0x2c   :  { %p917_p5 = scmp.ne.s32.totalorder %s61_s15, %s916_s19  ;;  %p922_p7 = scmp.lt.s32.totalorder %s916_s19, %s916_s19 }
  0x2e   :  { %p923_p8 = por %p922_p7, %p921_p6 }
  0x30   :  { %p924_p9 = pnand %p923_p8, %p917_p5 }
  0x32   :  { %927 = shalt.err (!%p924_p9)
}
  0x33   :  { %66 = dma.hbm_to_vmem [thread:$0]  %s1174_s9, 1024, %s61_s15, [#allocation6], %s957_s27, %s957_s27, %s958_s28  }
  0x34   :  { %950 = dma.done.wait [#allocation3], 16  }
  0x35   :  { %951 = vsyncadd [#allocation3], 4294967280 }
  0x36   :  { %952 = dma.done.wait [#allocation6], 2048  }
  0x37   :  { %953 = vsyncadd [#allocation6], 4294965248  ;;  %v961_v0 = vmov 0   ;;  %v79_v1 = vld [vmem:[%s1166_s1] sm:$0xff]  ;;  %vm311_vm0 = vcmask 1043456   ;;  %v962_v3 = vmov 0.0  }
  0x38   :  { %840 = vset.pattern.permute.xlu0 %v961_v0  ;;  %v306_v2 = vld [vmem:[%s1169_s4] sm:$0xf]  ;;  %763 = vmatprep.subr.bf16.mxu0 %v962_v3  ;;  %vm364_vm1 = vcmask 1045504   ;;  %vm963_vm2 = vmmov 0   ;;  %vm360_vm3 = vcmask 97280   ;;  %v843_v10 = vld [vmem:[#allocation5 + $0x8] sm:$0xff]  }
  0x39   :  { %83 = vperm.xlu0 %840, %v79_v1   ;;  %v313_v4 = vsel %vm311_vm0, %v306_v2, 0  ;;  %769 = vmatprep.subr.bf16.mxu1 %v962_v3  ;;  %v841_v5 = vld [vmem:[%s1168_s3] sm:$0x3f]   ;;  %v844_v11 = vld [vmem:[#allocation5 + $0x10] sm:$0xff]   ;;  %v964_v26 = vmov 683565275  }
  0x3a   :  { %764 = vmatpush3.bf16.msra.mxu0 %v313_v4  ;;  %765 = vmatprep.mubr.msk.bf16.mxu0 %vm963_vm2, %v962_v3  ;;  %v366_v6 = vsel %vm364_vm1, %v841_v5, 0  ;;  %v302_v7 = vld [vmem:[%s1165_s0] sm:$0xff]  ;;  %v965_v28 = vmov 2475754826   ;;  %v966_v31 = vmov 2131351028  }
  0x3b   :  { %771 = vmatprep.mubr.msk.bf16.mxu1 %vm963_vm2, %v962_v3  ;;  %775 = vmatprep.subr.bf16.mxu0 %v962_v3  ;;  %v303_v8 = vpack.c.bf16 %v302_v7, %v302_v7  ;;  %v842_v9 = vld [vmem:[#allocation5] sm:$0xff]   ;;  %v845_v12 = vld [vmem:[#allocation5 + $0x18] sm:$0xff]   ;;  %v967_v34 = vmov 2102212464   ;;  %v968_v37 = vmov 920167782  }
  0x3c   :  { %770 = vmatpush3.bf16.msra.mxu1 %v366_v6  ;;  %v707_v13 = vld [vmem:[#allocation2] ss:$0 sm:$0xff]  ;;  %v969_v40 = vmov 1326507024   ;;  %s970_s24 = smov [#allocation8]  }
  0x3d   :  { %781 = vmatprep.subr.bf16.mxu1 %v962_v3  ;;  %s697_s25 = sshll.u32 %s970_s24, 4  ;;  %s698_s25 = int_to_ptr.vmem [resolvable:$true] %s697_s25 }
  0x3e   :  { %p933_p11 = scmp.lt.s32.totalorder %s698_s25, %s698_s25 }
  0x3f   :  { %772 = vmatmul.mubr.msk.bf16.vlgmr.msra.gmra.mrb[0].mxu1 %vm360_vm3, %v303_v8 }
  0x40   :  { %797 = vmatprep.mubr.msk.bf16.mxu1 %vm963_vm2, %v962_v3  ;;  %782 = vmatpush3.bf16.msra.mxu1 %v842_v9 }
  0x41   :  { %783 = vmatprep.subr.bf16.mxu1 %v962_v3 }
  0x44   :  { %784 = vmatpush3.bf16.msra.mxu1 %v843_v10 }
  0x45   :  { %785 = vmatprep.subr.bf16.mxu1 %v962_v3 }
  0x48   :  { %786 = vmatpush3.bf16.msra.mxu1 %v844_v11 }
  0x49   :  { %787 = vmatprep.subr.bf16.mxu1 %v962_v3 }
  0x4c   :  { %788 = vmatpush3.bf16.msra.mxu1 %v845_v12 }
  0x4d   :  { %789 = vmatprep.subr.bf16.mxu1 %v962_v3 }
  0xb8   :  { %v84_v14 = vpop.permute.xlu0 %83 }
  0xb9   :  { %v1100_v15 = vmul.f32 %v707_v13, %v84_v14 }
  0xbb   :  { %v96_v16 = vand.u32 2139095040, %v1100_v15  ;;  %v93_v20 = vand.u32 2147483647, %v1100_v15  ;;  %vm95_vm11 = vcmp.lt.s32.totalorder %v1100_v15, 0  ;;  %vm185_vm1 = vweird.f32 %v1100_v15 }
  0xbd   :  { %v97_v17 = vshrl.u32 %v96_v16, 23  ;;  %v100_v23 = vand.u32 8388607, %v93_v20  ;;  %vm94_vm12 = vcmp.le.f32.partialorder %v93_v20, 0.7853982 }
  0xbe   :  { %v408_v20 = vld [vmem:[%s1170_s5] sm:$0xf] }
  0xbf   :  { %v708_v18 = vadd.s32 4294967169, %v97_v17  ;;  %v101_v42 = vor.u32 8388608, %v100_v23 }
  0xc1   :  { %v103_v19 = vadd.s32 1, %v708_v18  ;;  %v141_v56 = vshll.u32 %v101_v42, 8 }
  0xc3   :  { %vm104_vm4 = vcmp.gt.s32.totalorder %v103_v19, 0 }
  0xc4   :  { %v105_v21 = vsel %vm104_vm4, %v103_v19, 0 }
  0xc5   :  { %v107_v22 = vand.u32 31, %v105_v21  ;;  %v106_v25 = vshrl.u32 %v105_v21, 5 }
  0xc7   :  { %v108_v24 = vsub.s32 32, %v107_v22  ;;  %v110_v27 = vshll.u32 %v964_v26, %v107_v22  ;;  %v113_v29 = vshll.u32 %v965_v28, %v107_v22  ;;  %v116_v33 = vshll.u32 %v966_v31, %v107_v22 }
  0xc8   :  { %v119_v36 = vshll.u32 %v967_v34, %v107_v22  ;;  %v122_v39 = vshll.u32 %v968_v37, %v107_v22  ;;  %vm125_vm5 = vcmp.lt.s32.totalorder %v106_v25, 1  ;;  %vm128_vm6 = vcmp.lt.s32.totalorder %v106_v25, 4 }
  0xc9   :  { %v111_v30 = vshrl.u32 %v965_v28, %v108_v24  ;;  %v114_v32 = vshrl.u32 %v966_v31, %v108_v24  ;;  %v117_v35 = vshrl.u32 %v967_v34, %v108_v24  ;;  %v120_v38 = vshrl.u32 %v968_v37, %v108_v24 }
  0xca   :  { %v123_v41 = vshrl.u32 %v969_v40, %v108_v24  ;;  %v109_v51 = vshrl.u32 %v964_v26, %v108_v24  ;;  %vm127_vm7 = vcmp.lt.s32.totalorder %v106_v25, 3  ;;  %vm126_vm8 = vcmp.lt.s32.totalorder %v106_v25, 2 }
  0xcb   :  { %v112_v43 = vor.u32 %v111_v30, %v110_v27  ;;  %v115_v44 = vor.u32 %v114_v32, %v113_v29  ;;  %v118_v45 = vor.u32 %v117_v35, %v116_v33  ;;  %v121_v46 = vor.u32 %v120_v38, %v119_v36 }
  0xcc   :  { %v124_v47 = vor.u32 %v123_v41, %v122_v39 }
  0xcd   :  { %v130_v48 = vsel %vm128_vm6, %v118_v45, 2102212464  ;;  %v133_v49 = vsel %vm125_vm5, %v112_v43, %v115_v44  ;;  %v137_v50 = vsel %vm125_vm5, %v115_v44, %v118_v45  ;;  %v134_v52 = vsel %vm128_vm6, %v121_v46, 920167782 }
  0xce   :  { %v138_v53 = vsel %vm128_vm6, %v124_v47, 1326507024  ;;  %v135_v54 = vsel %vm127_vm7, %v118_v45, %v134_v52  ;;  %v129_v57 = vsel %vm125_vm5, %v109_v51, %v112_v43  ;;  %v131_v58 = vsel %vm127_vm7, %v115_v44, %v130_v48 }
  0xcf   :  { %v139_v55 = vsel %vm127_vm7, %v121_v46, %v138_v53  ;;  %v136_v59 = vsel %vm126_vm8, %v133_v49, %v135_v54  ;;  %v132_v1 = vsel %vm126_vm8, %v129_v57, %v131_v58  ;;  %vm307_vm5 = vcmask 64512   ;;  %v847_v58 = vld [vmem:[#allocation5 + $0x28] sm:$0xff]  }
  0xd0   :  { %v140_v60 = vsel %vm126_vm8, %v137_v50, %v139_v55  ;;  %v1109_v63 = vmul.u32.u64.low %v141_v56, %v136_v59  ;;  %v1110_v0 = vmul.u32.u64.high %v141_v56, %v136_v59, %v1109_v63  ;;  %v148_v4 = vmul.u32 %v141_v56, %v132_v1  ;;  %v846_v55 = vld [vmem:[#allocation5 + $0x20] sm:$0xff]  }
  0xd1   :  { %v1106_v61 = vmul.u32.u64.low %v141_v56, %v140_v60  ;;  %v1107_v62 = vmul.u32.u64.high %v141_v56, %v140_v60, %v1106_v61  ;;  %v413_v49 = vsel %vm311_vm0, %v408_v20, 0  ;;  %790 = vmatpush3.bf16.msra.mxu1 %v846_v55  ;;  %v848_v60 = vld [vmem:[#allocation5 + $0x30] sm:$0xff]   ;;  %v854_v1 = vld [vmem:[#allocation7 + $0x20] sm:$0xff]  }
  0xd2   :  { %v151_v2 = vadd.s32 1, %v1110_v0  ;;  %791 = vmatprep.subr.bf16.mxu1 %v962_v3  ;;  %v850_v61 = vld [vmem:[#allocation7] sm:$0xff]  }
  0xd3   :  { %vm150_vm9 = vc.u32 %v1107_v62, %v1109_v63  ;;  %v149_v17 = vadd.s32 %v1109_v63, %v1107_v62  ;;  %v851_v62 = vld [vmem:[#allocation7 + $0x8] sm:$0xff]   ;;  %v852_v63 = vld [vmem:[#allocation7 + $0x10] sm:$0xff]  }
  0xd4   :  { %v152_v5 = vsel %vm150_vm9, %v151_v2, %v1110_v0  ;;  %v853_v0 = vld [vmem:[#allocation7 + $0x18] sm:$0xff]   ;;  %v855_v2 = vld [vmem:[#allocation7 + $0x28] sm:$0xff]  }
  0xd5   :  { %v153_v6 = vadd.s32 %v152_v5, %v148_v4  ;;  %792 = vmatpush3.bf16.msra.mxu1 %v847_v58 }
  0xd6   :  { %793 = vmatprep.subr.bf16.mxu1 %v962_v3 }
  0xd7   :  { %v154_v7 = vadd.s32 536870912, %v153_v6 }
  0xd9   :  { %v155_v8 = vshrl.u32 %v154_v7, 30  ;;  %794 = vmatpush3.bf16.msra.mxu1 %v848_v60 }
  0xda   :  { %795 = vmatprep.subr.bf16.mxu1 %v962_v3 }
  0xdb   :  { %v156_v9 = vshll.u32 %v155_v8, 30  ;;  %v179_v30 = vsub.s32 4, %v155_v8 }
  0xdd   :  { %v157_v10 = vsub.s32 %v153_v6, %v156_v9  ;;  %v180_v33 = vsel %vm95_vm11, %v179_v30, %v155_v8  ;;  %v730_v30 = vld [vmem:[%s1175_s10] ss:$0 sm:$0xff] }
  0xde   :  { %v182_v35 = vsel %vm94_vm12, 0, %v180_v33 }
  0xdf   :  { %v159_v11 = vsub.s32 0, %v157_v10  ;;  %v186_v36 = vadd.s32 3, %v182_v35  ;;  %v291_v40 = vand.u32 3, %v182_v35 }
  0xe1   :  { %v709_v12 = vmin.u32 %v159_v11, %v157_v10  ;;  %v187_v37 = vand.u32 3, %v186_v36  ;;  %vm293_vm3 = vcmp.eq.s32.totalorder %v291_v40, 0  ;;  %vm296_vm4 = vcmp.eq.s32.totalorder %v291_v40, 2 }
  0xe2   :  { %vm292_vm6 = vcmp.lt.s32.totalorder %v291_v40, 2 }
  0xe3   :  { %v161_v13 = vclz %v709_v12  ;;  %vm192_vm13 = vcmp.eq.s32.totalorder %v187_v37, 2  ;;  %vm189_vm14 = vcmp.eq.s32.totalorder %v187_v37, 0  ;;  %vm188_vm15 = vcmp.lt.s32.totalorder %v187_v37, 2 }
  0xe5   :  { %v710_v14 = vadd.s32 4294967294, %v161_v13 }
  0xe7   :  { %vm711_vm10 = vcmp.lt.s32.totalorder %v710_v14, 0 }
  0xe8   :  { %v164_v16 = vsel %vm711_vm10, 0, %v710_v14 }
  0xe9   :  { %v165_v18 = vsub.s32 32, %v164_v16  ;;  %v169_v19 = vsub.s32 4294967266, %v164_v16  ;;  %v166_v21 = vshll.u32 %v157_v10, %v164_v16  ;;  %v720_v10 = vld [vmem:[%s1171_s6] ss:$0 sm:$0xff] }
  0xeb   :  { %v167_v22 = vshrl.u32 %v149_v17, %v165_v18  ;;  %v170_v23 = vadd.s32 127, %v169_v19  ;;  %v856_v19 = vld [vmem:[#allocation7 + $0x30] sm:$0xff]  }
  0xed   :  { %v168_v24 = vor.u32 %v167_v22, %v166_v21  ;;  %v171_v25 = vshll.u32 %v170_v23, 23  ;;  %v857_v21 = vld [vmem:[#allocation7 + $0x38] sm:$0xff]  }
  0xee   :  { %v721_v22 = vld [vmem:[%s1173_s8] ss:$0 sm:$0xff]  ;;  %s928_s8 = scalar_lea.vmem %s698_s25, 128 }
  0xef   :  { %v172_v26 = vor.u32 4788187, %v171_v25  ;;  %v175_v28 = vcvt.s32.f32 %v168_v24  ;;  %p929_p10 = scmp.ne.s32.totalorder %s698_s25, %s928_s8  ;;  %p934_p12 = scmp.lt.s32.totalorder %s928_s8, %s928_s8 }
  0xf1   :  { %v173_v27 = vand.u32 2147483647, %v172_v26  ;;  %p935_p13 = por %p934_p12, %p933_p11 }
  0xf3   :  { %v176_v29 = vmul.f32 %v175_v28, %v173_v27  ;;  %p936_p0 = pnand %p935_p13, %p929_p10 }
  0xf5   :  { %v177_v31 = vxor.u32 2147483648, %v176_v29 }
  0xf7   :  { %v178_v32 = vsel %vm95_vm11, %v177_v31, %v176_v29 }
  0xf8   :  { %v181_v34 = vsel %vm94_vm12, %v1100_v15, %v178_v32  ;;  %v849_v15 = vld [vmem:[#allocation5 + $0x38] sm:$0xff]  }
  0xf9   :  { %858 = vcosq.f32 %v181_v34  ;;  %796 = vmatpush3.bf16.msra.mxu1 %v849_v15 }
  0xfa   :  { %860 = vsinq.f32 %v181_v34 }
 0x103   :  { %v859_v38 = vpop.eup %858 }
 0x104   :  { %v861_v39 = vpop.eup %860  ;;  %v193_v41 = vxor.u32 2147483648, %v859_v38 }
 0x105   :  { %v190_v42 = vxor.u32 2147483648, %v861_v39 }
 0x106   :  { %v194_v43 = vsel %vm192_vm13, %v193_v41, %v861_v39  ;;  %v298_v48 = vsel %vm296_vm4, %v193_v41, %v861_v39 }
 0x107   :  { %v191_v44 = vsel %vm189_vm14, %v859_v38, %v190_v42  ;;  %v295_v47 = vsel %vm293_vm3, %v859_v38, %v190_v42 }
 0x108   :  { %v195_v45 = vsel %vm188_vm15, %v191_v44, %v194_v43  ;;  %v299_v51 = vsel %vm292_vm6, %v295_v47, %v298_v48 }
 0x109   :  { %v196_v46 = vsel %vm185_vm1, nan, %v195_v45  ;;  %v300_v52 = vsel %vm185_vm1, nan, %v299_v51 }
 0x10a   :  { %v197_v50 = vpack.c.bf16 %v196_v46, %v196_v46  ;;  %v301_v53 = vpack.c.bf16 %v300_v52, %v300_v52 }
 0x10c   :  { %766 = vmatmul.mubr.msk.bf16.vlgmr.msra.gmra.mrb[0].mxu0 %vm307_vm5, %v197_v50 }
 0x10d   :  { %776 = vmatpush3.bf16.msra.mxu0 %v413_v49  ;;  %777 = vmatprep.mubr.msk.bf16.mxu0 %vm963_vm2, %v962_v3 }
 0x10e   :  { %801 = vmatprep.subr.bf16.mxu0 %v962_v3 }
 0x112   :  { %v402_v54 = vpop.f32.mrb[0].mxu1 }
 0x113   :  { %v773_v56 = vpop.f32.mrb[1].mxu1 }
 0x114   :  { %778 = vmatmul.mubr.msk.bf16.vlgmr.msra.gmra.mrb[4].mxu0 %vm307_vm5, %v301_v53  ;;  %v405_v57 = vpop.f32.mrb[2].mxu1 }
 0x115   :  { %817 = vmatprep.mubr.msk.bf16.mxu0 %vm963_vm2, %v962_v3  ;;  %v774_v59 = vpop.f32.mrb[3].mxu1  ;;  %802 = vmatpush3.bf16.msra.mxu0 %v850_v61 }
 0x116   :  { %803 = vmatprep.subr.bf16.mxu0 %v962_v3 }
 0x119   :  { %804 = vmatpush3.bf16.msra.mxu0 %v851_v62 }
 0x11a   :  { %805 = vmatprep.subr.bf16.mxu0 %v962_v3 }
 0x11d   :  { %806 = vmatpush3.bf16.msra.mxu0 %v852_v63 }
 0x11e   :  { %807 = vmatprep.subr.bf16.mxu0 %v962_v3 }
 0x121   :  { %808 = vmatpush3.bf16.msra.mxu0 %v853_v0 }
 0x122   :  { %809 = vmatprep.subr.bf16.mxu0 %v962_v3 }
 0x125   :  { %810 = vmatpush3.bf16.msra.mxu0 %v854_v1 }
 0x126   :  { %811 = vmatprep.subr.bf16.mxu0 %v962_v3 }
 0x129   :  { %812 = vmatpush3.bf16.msra.mxu0 %v855_v2 }
 0x12a   :  { %813 = vmatprep.subr.bf16.mxu0 %v962_v3 }
 0x12d   :  { %814 = vmatpush3.bf16.msra.mxu0 %v856_v19 }
 0x12e   :  { %815 = vmatprep.subr.bf16.mxu0 %v962_v3 }
 0x131   :  { %816 = vmatpush3.bf16.msra.mxu0 %v857_v21 }
 0x1df   :  { %v349_v4 = vpop.f32.mrb[0].mxu0 }
 0x1e0   :  { %v403_v5 = vadd.f32 %v402_v54, %v349_v4  ;;  %v767_v6 = vpop.f32.mrb[1].mxu0 }
 0x1e1   :  { %v352_v7 = vpop.f32.mrb[2].mxu0 }
 0x1e2   :  { %v768_v8 = vpop.f32.mrb[3].mxu0 }
 0x1e7   :  { %v449_v9 = vpop.f32.mrb[4].mxu0 }
 0x1e8   :  { %v455_v11 = vadd.f32 %v449_v9, %v403_v5  ;;  %v779_v12 = vpop.f32.mrb[5].mxu0 }
 0x1e9   :  { %v452_v13 = vpop.f32.mrb[6].mxu0 }
 0x1ea   :  { %v463_v14 = vadd.f32 %v720_v10, %v455_v11  ;;  %v780_v16 = vpop.f32.mrb[7].mxu0 }
 0x1ec   :  { %v464_v17 = vmax.f32 %v463_v14, 0.0 }
 0x1ee   :  { %v465_v18 = vpack.c.bf16 %v464_v17, %v464_v17 }
 0x1f0   :  { %798 = vmatmul.mubr.bf16.vlgmr.msra.gmra.mrb[4].mxu1 %v465_v18 }
 0x2c3   :  { %v571_v23 = vpop.f32.mrb[4].mxu1 }
 0x2c4   :  { %v572_v24 = vadd.f32 %v721_v22, %v571_v23  ;;  %v799_v25 = vpop.f32.mrb[5].mxu1 }
 0x2c5   :  { %v574_v26 = vpop.f32.mrb[6].mxu1 }
 0x2c6   :  { %v577_v27 = vmax.f32 %v572_v24, 0.0  ;;  %v800_v28 = vpop.f32.mrb[7].mxu1 }
 0x2c8   :  { %v578_v29 = vpack.c.bf16 %v577_v27, %v577_v27 }
 0x2ca   :  { %818 = vmatmul.mubr.bf16.vlgmr.msra.gmra.mrb[8].mxu0 %v578_v29 }
 0x39d   :  { %v684_v3 = vpop.f32.mrb[8].mxu0 }
 0x39e   :  { %v685_v31 = vadd.f32 %v730_v30, %v684_v3  ;;  %v819_v32 = vpop.f32.mrb[9].mxu0 }
 0x39f   :  { %v687_v33 = vpop.f32.mrb[10].mxu0 }
 0x3a0   :  { %690 = vst [vmem:[#allocation8] sm:$0xff] %v685_v31  ;;  %v820_v34 = vpop.f32.mrb[11].mxu0 }
 0x3a1   :  { %939 = shalt.err (!%p936_p0)
}
 0x3a2   :  { %s940_s10 = scalar_lea.hbm %s1176_s11, 128 }
 0x3a3   :  { %p941_p1 = scmp.ne.s32.totalorder %s1176_s11, %s940_s10  ;;  %p944_p2 = scmp.lt.u32.totalorder %s940_s10, %s1176_s11 }
 0x3a5   :  { %p946_p3 = pnand %p944_p2, %p941_p1 }
 0x3a7   :  { %949 = shalt.err (!%p946_p3)
}
 0x3a8   :  { %700 = dma.vmem_to_hbm [thread:$0]  %s698_s25, 128, %s1176_s11, [#allocation4]  }
 0x3a9   :  { %954 = dma.done.wait [#allocation4], 128  }
 0x3aa   :  { %955 = vsyncadd [#allocation4], 4294967168 }
 0x3ab   :  { %704 = vsyncpa [#allocation3], 1 }
 0x3ac   :  { %705 = vsyncpa [#allocation6], 1 }
 0x3ad   :  { %706 = vsyncpa [#allocation4], 1 }

</bundles_post_ra>
